<compile_context>
chip_gen: v7x
topology: tpu7x:2x2x1
jax: 0.10.0
libtpu: 0.0.40
codegen_flags: <defaults>
</compile_context>

<pallas_src>
import functools

import jax
import jax.numpy as jnp
from jax.experimental import pallas as pl
from jax.experimental.pallas import tpu as pltpu

_LANES = 128


def _running_max_abs_kernel(x_ref, out_ref, *,
                            n_rows, tile_rows, n_inner, n_blocks):
    """Grid: (split, row-tile).  out_ref block (1,8,128) is the resident max."""
    s = pl.program_id(0)
    k = pl.program_id(1)

    @pl.when(k == 0)
    def _init():
        # |x| >= 0, so 0 is a safe identity for max(|x|).
        out_ref[...] = jnp.zeros_like(out_ref)

    # Stream HBM in the native dtype; upcast per tile in-kernel.
    a = jnp.abs(x_ref[...].astype(jnp.float32))

    logical_block = s * n_inner + k
    # Only the last real block can be partial; clamped duplicate blocks
    # (assigned to the final split past n_blocks) re-read it and must be
    # fully masked out.
    is_tail = logical_block >= (n_blocks - 1)

    @pl.when(jnp.logical_not(is_tail))
    def _full_tile():
        # Fold the tile to one (8,128) vreg with elementwise (VPU) maxes only.
        folded = jnp.max(a.reshape(tile_rows // 8, 8, _LANES), axis=0)
        out_ref[...] = jnp.maximum(out_ref[...], folded[None])

    @pl.when(is_tail)
    def _tail_tile():
        row0 = logical_block * tile_rows
        rid = jax.lax.broadcasted_iota(jnp.int32, (tile_rows, _LANES), 0) + row0
        am = jnp.where(rid < n_rows, a, 0.0)
        folded = jnp.max(am.reshape(tile_rows // 8, 8, _LANES), axis=0)
        out_ref[...] = jnp.maximum(out_ref[...], folded[None])


def running_stat_update(value, x, lr=0.1, tile_rows=2048):
    """Updated running value; same semantics as RunningStat.forward with
    stat_fcn(x) = max(|x|)."""
    itemsize = jnp.dtype(x.dtype).itemsize
    sublane = {4: 8, 2: 16, 1: 32}.get(itemsize, 8)

    flat = x.reshape(-1)
    # Tail pad to a multiple of 128 lanes (rare for NN shapes; zero pad is
    # safe since the statistic is max(|x|) >= 0).
    pad = (-flat.size) % _LANES
    if pad:
        flat = jnp.pad(flat, (0, pad))
    x2d = flat.reshape(-1, _LANES)
    rows = x2d.shape[0]
    rpad = (-rows) % sublane
    if rpad:
        x2d = jnp.pad(x2d, ((0, rpad), (0, 0)))
        rows += rpad

    # Large row tiles so the stream hits the HBM roofline, while staying a
    # multiple of the dtype's sublane packing and <= rows.  1 MiB/buffer at
    # the default (f32, 2048 rows): safe on v7x's smaller VMEM with the
    # default double-buffering.
    tile_rows = max(sublane, (int(tile_rows) // sublane) * sublane)
    tile_rows = min(tile_rows, rows)

    n_blocks = pl.cdiv(rows, tile_rows)     # total row tiles
    n_split = 2 if n_blocks >= 2 else 1     # 2-way split for v7x megacore
    n_inner = pl.cdiv(n_blocks, n_split)

    def x_index_map(s, k):
        # Clamp: the last split may be assigned a few out-of-range logical
        # blocks; they re-read the final valid block and are fully masked
        # out inside the kernel (harmless for a max reduction).
        return (jnp.minimum(s * n_inner + k, n_blocks - 1), 0)

    kernel = functools.partial(
        _running_max_abs_kernel,
        n_rows=rows, tile_rows=tile_rows, n_inner=n_inner, n_blocks=n_blocks)

    partials = pl.pallas_call(
        kernel,
        out_shape=jax.ShapeDtypeStruct((n_split, 8, _LANES), jnp.float32),
        grid_spec=pltpu.PrefetchScalarGridSpec(
            num_scalar_prefetch=0,
            grid=(n_split, n_inner),
            in_specs=[pl.BlockSpec((tile_rows, _LANES), x_index_map)],
            out_specs=pl.BlockSpec((1, 8, _LANES), lambda s, k: (s, 0, 0)),
        ),
        compiler_params=pltpu.CompilerParams(
            dimension_semantics=("parallel", "arbitrary")),
    )(x2d)

    # Tiny epilogue: combine per-split partial maxes and apply the EMA
    # (value <- (1 - lr) * value + lr * stat), keeping lr/value as runtime
    # values (no per-lr recompile).
    value = jnp.asarray(value, jnp.float32)
    lr = jnp.asarray(lr, jnp.float32)
    stat = jnp.max(partials)
    return (1.0 - lr) * value + lr * stat


if __name__ == "__main__":
    key = jax.random.PRNGKey(0)
    # Small NCHW conv-style input consistent with a quantizer observer.
    x = jax.random.normal(key, (2, 4, 16, 16), dtype=jnp.float32)

    # Deterministic "parameter" init (RunningStat.__init__: value = fp32(init_val)).
    init_val = 1.0
    lr = 0.1

    new_value = jax.block_until_ready(running_stat_update(init_val, x, lr=lr))

    # Pure-JAX reference of the forward pass.
    ref = (1.0 - lr) * jnp.float32(init_val) + lr * jnp.max(jnp.abs(x))
    assert jnp.allclose(new_value, ref, rtol=1e-6, atol=1e-6), (new_value, ref)

    # Extra check: ragged size exercising lane pad, multi-block grid, the
    # 2-way split with a clamped duplicate block, and the partial-tail mask.
    x2 = jax.random.normal(jax.random.PRNGKey(1), (4, 33, 67, 35),
                           dtype=jnp.float32)
    v2 = jax.block_until_ready(
        running_stat_update(0.5, x2, lr=0.25, tile_rows=512))
    ref2 = (1.0 - 0.25) * jnp.float32(0.5) + 0.25 * jnp.max(jnp.abs(x2))
    assert jnp.allclose(v2, ref2, rtol=1e-6, atol=1e-6), (v2, ref2)

    print("KERNEL_OK")
</pallas_src>

<mosaic_0001>
module attributes {stable_mosaic.version = 11 : i64} {
  func.func @_running_max_abs_kernel(%arg0: i32, %arg1: i32, %arg2: memref<16x128xf32, #tpu.memory_space<vmem>>, %arg3: memref<1x8x128xf32, #tpu.memory_space<vmem>>) attributes {dimension_semantics = [#tpu.dimension_semantics<parallel>, #tpu.dimension_semantics<arbitrary>], iteration_bounds = array<i64: 1, 1>, scalar_prefetch = 0 : i64, scratch_operands = 0 : i64, tpu.core_type = #tpu.core_type<tc>, window_params = [{transform_indices = @transform_0, window_bounds = array<i64: 16, 128>}, {transform_indices = @transform_1, window_bounds = array<i64: 1, 8, 128>}]} {
    %c0_i32 = arith.constant 0 : i32
    %0 = arith.cmpi eq, %arg1, %c0_i32 : i32
    %1 = arith.extui %0 : i1 to i32
    %c0_i32_0 = arith.constant 0 : i32
    %2 = arith.cmpi ne, %1, %c0_i32_0 : i32
    scf.if %2 {
      %cst = arith.constant 0.000000e+00 : f32
      %13 = vector.broadcast %cst : f32 to vector<1x8x128xf32>
      %c0_5 = arith.constant 0 : index
      %c0_6 = arith.constant 0 : index
      %c0_7 = arith.constant 0 : index
      %14 = vector.load %arg3[%c0_5, %c0_6, %c0_7] : memref<1x8x128xf32, #tpu.memory_space<vmem>>, vector<1x8x128xf32>
      tpu.vector_store %arg3[%c0_5, %c0_6, %c0_7], %13 {strides = array<i32>} : memref<1x8x128xf32, #tpu.memory_space<vmem>>, vector<1x8x128xf32>,
    } else {
    }
    %c0 = arith.constant 0 : index
    %c0_1 = arith.constant 0 : index
    %3 = vector.load %arg2[%c0, %c0_1] : memref<16x128xf32, #tpu.memory_space<vmem>>, vector<16x128xf32>
    %4 = math.absf %3 : vector<16x128xf32>
    %c1_i32 = arith.constant 1 : i32
    %5 = arith.muli %arg0, %c1_i32 : i32
    %6 = arith.addi %5, %arg1 : i32
    %c0_i32_2 = arith.constant 0 : i32
    %7 = arith.cmpi sge, %6, %c0_i32_2 : i32
    %true = arith.constant true
    %8 = arith.xori %7, %true : i1
    %9 = arith.extui %8 : i1 to i32
    %c0_i32_3 = arith.constant 0 : i32
    %10 = arith.cmpi ne, %9, %c0_i32_3 : i32
    scf.if %10 {
      %13 = vector.shape_cast %4 : vector<16x128xf32> to vector<2x8x128xf32>
      %cst = arith.constant dense<0xFF800000> : vector<8x128xf32>
      %14 = vector.multi_reduction <maximumf>, %13, %cst [0] : vector<2x8x128xf32> to vector<8x128xf32>
      %c0_5 = arith.constant 0 : index
      %c0_6 = arith.constant 0 : index
      %c0_7 = arith.constant 0 : index
      %15 = vector.load %arg3[%c0_5, %c0_6, %c0_7] : memref<1x8x128xf32, #tpu.memory_space<vmem>>, vector<1x8x128xf32>
      %16 = vector.shape_cast %14 : vector<8x128xf32> to vector<1x8x128xf32>
      %17 = arith.maximumf %15, %16 : vector<1x8x128xf32>
      %c0_8 = arith.constant 0 : index
      %c0_9 = arith.constant 0 : index
      %c0_10 = arith.constant 0 : index
      %18 = vector.load %arg3[%c0_8, %c0_9, %c0_10] : memref<1x8x128xf32, #tpu.memory_space<vmem>>, vector<1x8x128xf32>
      tpu.vector_store %arg3[%c0_8, %c0_9, %c0_10], %17 {strides = array<i32>} : memref<1x8x128xf32, #tpu.memory_space<vmem>>, vector<1x8x128xf32>,
    } else {
    }
    %11 = arith.extui %7 : i1 to i32
    %c0_i32_4 = arith.constant 0 : i32
    %12 = arith.cmpi ne, %11, %c0_i32_4 : i32
    scf.if %12 {
      %c16_i32 = arith.constant 16 : i32
      %13 = arith.muli %6, %c16_i32 : i32
      %14 = tpu.iota {dimensions = array<i32: 0>} : vector<16x128xi32>
      %15 = vector.broadcast %13 : i32 to vector<16x128xi32>
      %16 = arith.addi %14, %15 : vector<16x128xi32>
      %c16_i32_5 = arith.constant 16 : i32
      %17 = vector.broadcast %c16_i32_5 : i32 to vector<16x128xi32>
      %18 = arith.cmpi slt, %16, %17 : vector<16x128xi32>
      %cst = arith.constant 0.000000e+00 : f32
      %19 = vector.broadcast %cst : f32 to vector<16x128xf32>
      %20 = arith.select %18, %4, %19 : vector<16x128xi1>, vector<16x128xf32>
      %21 = vector.shape_cast %20 : vector<16x128xf32> to vector<2x8x128xf32>
      %cst_6 = arith.constant dense<0xFF800000> : vector<8x128xf32>
      %22 = vector.multi_reduction <maximumf>, %21, %cst_6 [0] : vector<2x8x128xf32> to vector<8x128xf32>
      %c0_7 = arith.constant 0 : index
      %c0_8 = arith.constant 0 : index
      %c0_9 = arith.constant 0 : index
      %23 = vector.load %arg3[%c0_7, %c0_8, %c0_9] : memref<1x8x128xf32, #tpu.memory_space<vmem>>, vector<1x8x128xf32>
      %24 = vector.shape_cast %22 : vector<8x128xf32> to vector<1x8x128xf32>
      %25 = arith.maximumf %23, %24 : vector<1x8x128xf32>
      %c0_10 = arith.constant 0 : index
      %c0_11 = arith.constant 0 : index
      %c0_12 = arith.constant 0 : index
      %26 = vector.load %arg3[%c0_10, %c0_11, %c0_12] : memref<1x8x128xf32, #tpu.memory_space<vmem>>, vector<1x8x128xf32>
      tpu.vector_store %arg3[%c0_10, %c0_11, %c0_12], %25 {strides = array<i32>} : memref<1x8x128xf32, #tpu.memory_space<vmem>>, vector<1x8x128xf32>,
    } else {
    }
    return
  }
  func.func @transform_0(%arg0: i32, %arg1: i32) -> (i32, i32) {
    %c1_i32 = arith.constant 1 : i32
    %0 = arith.muli %arg0, %c1_i32 : i32
    %1 = arith.addi %0, %arg1 : i32
    %c0_i32 = arith.constant 0 : i32
    %2 = arith.minsi %1, %c0_i32 : i32
    %c0_i32_0 = arith.constant 0 : i32
    %c0_i32_1 = arith.constant 0 : i32
    return %2, %c0_i32_0 : i32, i32
  }
  func.func @transform_1(%arg0: i32, %arg1: i32) -> (i32, i32, i32) {
    %c0_i32 = arith.constant 0 : i32
    %c0_i32_0 = arith.constant 0 : i32
    %c0_i32_1 = arith.constant 0 : i32
    return %arg0, %c0_i32, %c0_i32_0 : i32, i32, i32
  }
}

</mosaic_0001>

<bundles_post_ra>
// kernel: tpu_custom_call.1
= control target key start
LH: loop header
LB: loop body
LE: loop exit
PB: predicated region body
PF: predicated region fallthrough
CT: control target
= control target key end

     0   :  { %6 = vsyncpa [#allocation3], 0  ;;  %s178_s0 = inlined_call_operand.hbm [shape: f32[16,128], index: 0, kind: input, shape index: {}]   ;;  %s179_s1 = inlined_call_operand.hbm [shape: f32[1,8,128], index: 1, kind: output, shape index: {}]  }
   0x1   :  { %7 = vsyncpa [#allocation4], 0  ;;  %s140_s6 = smov [#allocation2]   ;;  %s92_s10 = scalar_lea.hbm %s178_s0, 256 }
   0x2   :  { %s19_s7 = sshll.u32 %s140_s6, 4  ;;  %p93_p0 = scmp.ne.s32.totalorder %s178_s0, %s92_s10  ;;  %s20_s7 = int_to_ptr.vmem [resolvable:$true] %s19_s7 }
   0x3   :  { %p96_p1 = scmp.lt.u32.totalorder %s92_s10, %s178_s0 }
   0x5   :  { %p98_p2 = pnand %p96_p1, %p93_p0 }
   0x7   :  { %101 = shalt.err (!%p98_p2)
}
   0x8   :  { %s102_s15 = scalar_lea.vmem %s20_s7, 256  ;;  %p107_p4 = scmp.lt.s32.totalorder %s20_s7, %s20_s7 }
   0x9   :  { %p103_p3 = scmp.ne.s32.totalorder %s20_s7, %s102_s15  ;;  %p108_p5 = scmp.lt.s32.totalorder %s102_s15, %s102_s15 }
   0xb   :  { %p109_p6 = por %p108_p5, %p107_p4 }
   0xd   :  { %p110_p7 = pnand %p109_p6, %p103_p3 }
   0xf   :  { %113 = shalt.err (!%p110_p7)
}
  0x10   :  { %s141_s16 = smov 128   ;;  %s142_s17 = smov 8  }
  0x11   :  { %25 = dma.hbm_to_vmem [thread:$0]  %s178_s0, 256, %s20_s7, [#allocation3], %s141_s16, %s141_s16, %s142_s17  }
  0x12   :  { %136 = dma.done.wait [#allocation3], 256  }
  0x13   :  { %137 = vsyncadd [#allocation3], 4294967040  ;;  %v38_v0 = vld [vmem:[#allocation2] sm:$0xff]  ;;  %v39_v1 = vld [vmem:[#allocation2 + $0x8] sm:$0xff]  ;;  %s143_s20 = smov [#allocation5]  }
  0x14   :  { %v40_v2 = vand.u32 2147483647, %v38_v0  ;;  %v41_v3 = vand.u32 2147483647, %v39_v1  ;;  %s76_s21 = sshll.u32 %s143_s20, 4  ;;  %s77_s21 = int_to_ptr.vmem [resolvable:$true] %s76_s21 }
  0x15   :  { %s114_s22 = scalar_lea.vmem %s77_s21, 128  ;;  %p119_p9 = scmp.lt.s32.totalorder %s77_s21, %s77_s21 }
  0x16   :  { %v66_v4 = vmax.f32.f32 %v40_v2, %v41_v3  ;;  %p115_p8 = scmp.ne.s32.totalorder %s77_s21, %s114_s22  ;;  %p120_p10 = scmp.lt.s32.totalorder %s114_s22, %s114_s22 }
  0x18   :  { %v68_v5 = vmax.f32 %v66_v4, 0.0  ;;  %p121_p11 = por %p120_p10, %p119_p9 }
  0x1a   :  { %69 = vst [vmem:[#allocation5] sm:$0xff] %v68_v5  ;;  %p122_p12 = pnand %p121_p11, %p115_p8 }
  0x1c   :  { %125 = shalt.err (!%p122_p12)
}
  0x1d   :  { %s126_s24 = scalar_lea.hbm %s179_s1, 128 }
  0x1e   :  { %p127_p13 = scmp.ne.s32.totalorder %s179_s1, %s126_s24  ;;  %p130_p0 = scmp.lt.u32.totalorder %s126_s24, %s179_s1 }
  0x20   :  { %p132_p1 = pnand %p130_p0, %p127_p13 }
  0x22   :  { %135 = shalt.err (!%p132_p1)
}
  0x23   :  { %79 = dma.vmem_to_hbm [thread:$0]  %s77_s21, 128, %s179_s1, [#allocation4]  }
  0x24   :  { %138 = dma.done.wait [#allocation4], 128  }
  0x25   :  { %139 = vsyncadd [#allocation4], 4294967168 }
  0x26   :  { %83 = vsyncpa [#allocation3], 1 }
  0x27   :  { %84 = vsyncpa [#allocation4], 1 }

</bundles_post_ra>
